<compile_context>
chip_gen: v7x
topology: tpu7x:2x2x1
jax: 0.10.0
libtpu: 0.0.40
codegen_flags: <defaults>
</compile_context>

<pallas_src>
import jax
import jax.numpy as jnp
from jax.experimental import pallas as pl
from jax.experimental.pallas import tpu as pltpu

K_IN = 28 * 28   # 784
H1 = 128         # fc1 width
OUT = 10         # fc2 width


def _round_up(n, m):
    return ((n + m - 1) // m) * m


def mlp_kernel(x_ref, w1_ref, b1_ref, w2_ref, b2_ref, o_ref):
    # x_ref:  (TB, 784) bf16    w1_ref: (784, 128) bf16   b1_ref: (1, 128) f32
    # w2_ref: (128, 10) f32     b2_ref: (1, 10) f32       o_ref:  (TB, 10) f32
    h = jnp.dot(x_ref[...], w1_ref[...], preferred_element_type=jnp.float32)
    h = jnp.maximum(h + b1_ref[...], 0.0)                     # bias + ReLU in f32
    y = jnp.dot(h, w2_ref[...], preferred_element_type=jnp.float32) + b2_ref[...]
    o_ref[...] = y.astype(o_ref.dtype)


def net_forward(x, w1, b1, w2, b2, *, max_tb=2048):
    """Equivalent of Net.forward. x: (B, 1, 28, 28) or anything reshapable to (B, 784)."""
    B = x.shape[0]

    # bf16 activations / fc1 weights (f32 accumulation in the kernel). In a real
    # pipeline the producer should emit bf16 directly rather than casting here.
    x2d = x.reshape(B, K_IN).astype(jnp.bfloat16)
    w1_b = w1.astype(jnp.bfloat16)
    b1_2d = b1.astype(jnp.float32).reshape(1, H1)
    w2_f = w2.astype(jnp.float32)
    b2_2d = b2.astype(jnp.float32).reshape(1, OUT)

    # Batch tile: multiple of 8 rows; for large B aim for ~8+ grid steps so both
    # v7x TensorCores stay busy and x DMAs overlap the MXU; capped at max_tb
    # (TB=2048 bf16 x => ~2 x 3.2 MiB double-buffered, fine on all generations).
    TB = min(max_tb, _round_up(pl.cdiv(B, 8), 256), _round_up(B, 8))
    TB = max(TB, 8)
    grid = (pl.cdiv(B, TB),)

    flops = 2 * B * (K_IN * H1 + H1 * OUT)
    bytes_accessed = (
        2 * B * K_IN                    # x (bf16)
        + 2 * K_IN * H1                 # w1 (bf16)
        + 4 * (H1 + H1 * OUT + OUT)     # b1, w2, b2 (f32)
        + 4 * B * OUT                   # output (f32)
    )

    out = pl.pallas_call(
        mlp_kernel,
        out_shape=jax.ShapeDtypeStruct((B, OUT), jnp.float32),
        grid=grid,
        in_specs=[
            pl.BlockSpec((TB, K_IN), lambda i: (i, 0)),   # x: tiled over batch
            pl.BlockSpec((K_IN, H1), lambda i: (0, 0)),   # w1: VMEM-resident
            pl.BlockSpec((1, H1), lambda i: (0, 0)),      # b1: resident
            pl.BlockSpec((H1, OUT), lambda i: (0, 0)),    # w2: resident
            pl.BlockSpec((1, OUT), lambda i: (0, 0)),     # b2: resident
        ],
        out_specs=pl.BlockSpec((TB, OUT), lambda i: (i, 0)),
        compiler_params=pltpu.CompilerParams(
            dimension_semantics=("parallel",),   # shard batch tiles across TCs (v7x)
            vmem_limit_bytes=24 * 1024 * 1024,   # ~7 MiB actually needed at TB=2048
        ),
        cost_estimate=pl.CostEstimate(
            flops=flops, transcendentals=0, bytes_accessed=bytes_accessed
        ),
    )(x2d, w1_b, b1_2d, w2_f, b2_2d)
    # TODO(synk): mark the constant-index weight/bias specs pipeline_mode=pl.Buffered(1)
    # when pushing TB to the VMEM ceiling on v7x (saves ~0.5 MiB of double buffers).
    return out


def init_params(key):
    """Deterministic init matching nn.Linear default (U(-1/sqrt(fan_in), 1/sqrt(fan_in)))."""
    k1, k2, k3, k4 = jax.random.split(key, 4)
    bound1 = 1.0 / jnp.sqrt(K_IN)
    w1 = jax.random.uniform(k1, (K_IN, H1), jnp.float32, -bound1, bound1)
    b1 = jax.random.uniform(k2, (H1,), jnp.float32, -bound1, bound1)
    bound2 = 1.0 / jnp.sqrt(H1)
    w2 = jax.random.uniform(k3, (H1, OUT), jnp.float32, -bound2, bound2)
    b2 = jax.random.uniform(k4, (OUT,), jnp.float32, -bound2, bound2)
    return w1, b1, w2, b2


def _reference(x, w1, b1, w2, b2):
    x2d = x.reshape(x.shape[0], -1).astype(jnp.float32)
    return jnp.maximum(x2d @ w1 + b1, 0.0) @ w2 + b2


if __name__ == "__main__":
    key = jax.random.PRNGKey(0)
    kx, kx2, kp = jax.random.split(key, 3)
    w1, b1, w2, b2 = init_params(kp)

    # Small batch (single ragged tile: 2 rows inside an 8-row block).
    B = 2
    x = jax.random.normal(kx, (B, 1, 28, 28), jnp.float32)  # NCHW like PyTorch
    out = jax.block_until_ready(net_forward(x, w1, b1, w2, b2))
    ref = _reference(x, w1, b1, w2, b2)
    assert out.shape == (B, OUT)
    assert jnp.allclose(out, ref, atol=2e-2, rtol=2e-2), float(jnp.max(jnp.abs(out - ref)))

    # Multi-step grid with a ragged last tile (130 = 2*64 + 2).
    B2 = 130
    x2 = jax.random.normal(kx2, (B2, 1, 28, 28), jnp.float32)
    out2 = jax.block_until_ready(net_forward(x2, w1, b1, w2, b2, max_tb=64))
    ref2 = _reference(x2, w1, b1, w2, b2)
    assert out2.shape == (B2, OUT)
    assert jnp.allclose(out2, ref2, atol=2e-2, rtol=2e-2), float(jnp.max(jnp.abs(out2 - ref2)))

    print("KERNEL_OK")
</pallas_src>

<mosaic_0001>
module attributes {stable_mosaic.version = 11 : i64} {
  func.func @mlp_kernel(%arg0: i32, %arg1: memref<8x784xbf16, #tpu.memory_space<vmem>>, %arg2: memref<784x128xbf16, #tpu.memory_space<vmem>>, %arg3: memref<1x128xf32, #tpu.memory_space<vmem>>, %arg4: memref<128x10xf32, #tpu.memory_space<vmem>>, %arg5: memref<1x10xf32, #tpu.memory_space<vmem>>, %arg6: memref<8x10xf32, #tpu.memory_space<vmem>>) attributes {dimension_semantics = [#tpu.dimension_semantics<parallel>], iteration_bounds = array<i64: 1>, scalar_prefetch = 0 : i64, scratch_operands = 0 : i64, tpu.core_type = #tpu.core_type<tc>, window_params = [{transform_indices = @transform_0, window_bounds = array<i64: 8, 784>}, {pipeline_mode = #tpu.pipeline_mode<synchronous>, transform_indices = @transform_1, window_bounds = array<i64: 784, 128>}, {pipeline_mode = #tpu.pipeline_mode<synchronous>, transform_indices = @transform_2, window_bounds = array<i64: 1, 128>}, {pipeline_mode = #tpu.pipeline_mode<synchronous>, transform_indices = @transform_3, window_bounds = array<i64: 128, 10>}, {pipeline_mode = #tpu.pipeline_mode<synchronous>, transform_indices = @transform_4, window_bounds = array<i64: 1, 10>}, {transform_indices = @transform_5, window_bounds = array<i64: 8, 10>}]} {
    %c0 = arith.constant 0 : index
    %c0_0 = arith.constant 0 : index
    %0 = vector.load %arg1[%c0, %c0_0] : memref<8x784xbf16, #tpu.memory_space<vmem>>, vector<8x784xbf16>
    %c0_1 = arith.constant 0 : index
    %c0_2 = arith.constant 0 : index
    %1 = vector.load %arg2[%c0_1, %c0_2] : memref<784x128xbf16, #tpu.memory_space<vmem>>, vector<784x128xbf16>
    %cst = arith.constant dense<0.000000e+00> : vector<8x128xf32>
    %2 = tpu.matmul %0, %1, %cst {dimension_numbers = #tpu.dot_dimension_numbers<[1], [0], [0], [1], [0, 0, 1, 1], [], []>} : vector<8x784xbf16>, vector<784x128xbf16>, vector<8x128xf32> -> vector<8x128xf32>
    %c0_3 = arith.constant 0 : index
    %c0_4 = arith.constant 0 : index
    %3 = vector.load %arg3[%c0_3, %c0_4] : memref<1x128xf32, #tpu.memory_space<vmem>>, vector<1x128xf32>
    %4 = vector.broadcast %3 : vector<1x128xf32> to vector<8x128xf32>
    %5 = arith.addf %2, %4 : vector<8x128xf32>
    %cst_5 = arith.constant 0.000000e+00 : f32
    %6 = vector.broadcast %cst_5 : f32 to vector<8x128xf32>
    %7 = arith.maximumf %5, %6 : vector<8x128xf32>
    %c0_6 = arith.constant 0 : index
    %c0_7 = arith.constant 0 : index
    %8 = vector.load %arg4[%c0_6, %c0_7] : memref<128x10xf32, #tpu.memory_space<vmem>>, vector<128x10xf32>
    %cst_8 = arith.constant dense<0.000000e+00> : vector<8x10xf32>
    %9 = tpu.matmul %7, %8, %cst_8 {dimension_numbers = #tpu.dot_dimension_numbers<[1], [0], [0], [1], [0, 0, 1, 1], [], []>} : vector<8x128xf32>, vector<128x10xf32>, vector<8x10xf32> -> vector<8x10xf32>
    %c0_9 = arith.constant 0 : index
    %c0_10 = arith.constant 0 : index
    %10 = vector.load %arg5[%c0_9, %c0_10] : memref<1x10xf32, #tpu.memory_space<vmem>>, vector<1x10xf32>
    %11 = vector.broadcast %10 : vector<1x10xf32> to vector<8x10xf32>
    %12 = arith.addf %9, %11 : vector<8x10xf32>
    %c0_11 = arith.constant 0 : index
    %c0_12 = arith.constant 0 : index
    %13 = vector.load %arg6[%c0_11, %c0_12] : memref<8x10xf32, #tpu.memory_space<vmem>>, vector<8x10xf32>
    tpu.vector_store %arg6[%c0_11, %c0_12], %12 {strides = array<i32>} : memref<8x10xf32, #tpu.memory_space<vmem>>, vector<8x10xf32>,
    return
  }
  func.func @transform_0(%arg0: i32) -> (i32, i32) {
    %c0_i32 = arith.constant 0 : i32
    %c0_i32_0 = arith.constant 0 : i32
    return %arg0, %c0_i32 : i32, i32
  }
  func.func @transform_1(%arg0: i32) -> (i32, i32) {
    %c0_i32 = arith.constant 0 : i32
    %c0_i32_0 = arith.constant 0 : i32
    %c0_i32_1 = arith.constant 0 : i32
    return %c0_i32, %c0_i32_0 : i32, i32
  }
  func.func @transform_2(%arg0: i32) -> (i32, i32) {
    %c0_i32 = arith.constant 0 : i32
    %c0_i32_0 = arith.constant 0 : i32
    %c0_i32_1 = arith.constant 0 : i32
    return %c0_i32, %c0_i32_0 : i32, i32
  }
  func.func @transform_3(%arg0: i32) -> (i32, i32) {
    %c0_i32 = arith.constant 0 : i32
    %c0_i32_0 = arith.constant 0 : i32
    %c0_i32_1 = arith.constant 0 : i32
    return %c0_i32, %c0_i32_0 : i32, i32
  }
  func.func @transform_4(%arg0: i32) -> (i32, i32) {
    %c0_i32 = arith.constant 0 : i32
    %c0_i32_0 = arith.constant 0 : i32
    %c0_i32_1 = arith.constant 0 : i32
    return %c0_i32, %c0_i32_0 : i32, i32
  }
  func.func @transform_5(%arg0: i32) -> (i32, i32) {
    %c0_i32 = arith.constant 0 : i32
    %c0_i32_0 = arith.constant 0 : i32
    return %arg0, %c0_i32 : i32, i32
  }
}

</mosaic_0001>

<bundles_post_ra>
// kernel: tpu_custom_call.1
= control target key start
LH: loop header
LB: loop body
LE: loop exit
PB: predicated region body
PF: predicated region fallthrough
CT: control target
= control target key end

     0   :  { %10 = vsyncpa [#allocation3], 0  ;;  %s1240_s0 = inlined_call_operand.vmem [shape: bf16[2,784], index: 0, kind: input, shape index: {}]   ;;  %s1241_s1 = inlined_call_operand.hbm [shape: bf16[784,128], index: 1, kind: input, shape index: {}]   ;;  %s1242_s2 = inlined_call_operand.vmem [shape: f32[1,128], index: 2, kind: input, shape index: {}]   ;;  %s1243_s3 = inlined_call_operand.vmem [shape: f32[128,10], index: 3, kind: input, shape index: {}]   ;;  %s1244_s4 = inlined_call_operand.vmem [shape: f32[1,10], index: 4, kind: input, shape index: {}]   ;;  %s1245_s5 = inlined_call_operand.hbm [shape: f32[2,10], index: 5, kind: output, shape index: {}]  }
   0x1   :  { %11 = vsyncpa [#allocation4], 0  ;;  %s1108_s18 = smov [#allocation2]   ;;  %s1060_s22 = scalar_lea.hbm %s1241_s1, 6272 }
   0x2   :  { %s19_s19 = sshll.u32 %s1108_s18, 4  ;;  %p1061_p0 = scmp.ne.s32.totalorder %s1241_s1, %s1060_s22  ;;  %s20_s19 = int_to_ptr.vmem [resolvable:$true] %s19_s19 }
   0x3   :  { %p1064_p1 = scmp.lt.u32.totalorder %s1060_s22, %s1241_s1 }
   0x5   :  { %p1066_p2 = pnand %p1064_p1, %p1061_p0 }
   0x7   :  { %1069 = shalt.err (!%p1066_p2)
}
   0x8   :  { %s1070_s27 = scalar_lea.vmem %s20_s19, 6272  ;;  %p1075_p4 = scmp.lt.s32.totalorder %s20_s19, %s20_s19 }
   0x9   :  { %p1071_p3 = scmp.ne.s32.totalorder %s20_s19, %s1070_s27  ;;  %p1076_p5 = scmp.lt.s32.totalorder %s1070_s27, %s1070_s27 }
   0xb   :  { %p1077_p6 = por %p1076_p5, %p1075_p4 }
   0xd   :  { %p1078_p7 = pnand %p1077_p6, %p1071_p3 }
   0xf   :  { %1081 = shalt.err (!%p1078_p7)
}
  0x10   :  { %s1109_s28 = smov 64   ;;  %s1110_s29 = smov 4  }
  0x11   :  { %25 = dma.hbm_to_vmem [thread:$0]  %s1241_s1, 6272, %s20_s19, [#allocation3], %s1109_s28, %s1109_s28, %s1110_s29  }
  0x12   :  { %1104 = dma.done.wait [#allocation3], 6272  }
  0x13   :  { %1105 = vsyncadd [#allocation3], 4294961024  ;;  %v1005_v0 = vld [vmem:[#allocation2 + $0x40] sm:$0xff]   ;;  %v1009_v4 = vld [vmem:[#allocation2 + $0x48] sm:$0xff]   ;;  %v1111_v23 = vmov 1966171168   ;;  %v156_v25 = vlaneseq }
  0x14   :  { %v1006_v1 = vld [vmem:[#allocation2] sm:$0xff]   ;;  %845 = vmatprep.subr.bf16.mxu0 %v1005_v0  ;;  %v1010_v5 = vld [vmem:[#allocation2 + $0x8] sm:$0xff]   ;;  %v1013_v8 = vld [vmem:[#allocation2 + $0x50] sm:$0xff]   ;;  %v154_v24 = vunpack.c.l.s4 %v1111_v23  ;;  %v1112_v49 = vmov 0.0   ;;  %vm1113_vm0 = vmmov 0   ;;  %vm516_vm1 = vcmask 130048  }
  0x15   :  { %v1007_v2 = vld [vmem:[#allocation2 + $0xc0] sm:$0xff]   ;;  %846 = vmatpush3.bf16.msra.mxu0 %v1006_v1  ;;  %v1011_v6 = vld [vmem:[#allocation2 + $0xc8] sm:$0xff]   ;;  %v1014_v9 = vld [vmem:[#allocation2 + $0x10] sm:$0xff]   ;;  %v157_v31 = vshrl.u32 %v156_v25, 7  ;;  %vm774_vm2 = vcmask 80896  }
  0x16   :  { %v1008_v3 = vld [vmem:[#allocation2 + $0x80] sm:$0xff]   ;;  %867 = vmatprep.subr.bf16.mxu1 %v1007_v2  ;;  %847 = vmatprep.subr.bf16.mxu0 %v1009_v4  ;;  %v1012_v7 = vld [vmem:[#allocation2 + $0x88] sm:$0xff]   ;;  %v1015_v10 = vld [vmem:[#allocation2 + $0xd0] sm:$0xff]   ;;  %v155_v30 = vunpack.c.0.s8 %v154_v24 }
  0x17   :  { %868 = vmatpush3.bf16.msra.mxu1 %v1008_v3  ;;  %v1016_v11 = vld [vmem:[#allocation2 + $0x90] sm:$0xff]   ;;  %v1017_v12 = vld [vmem:[#allocation2 + $0x58] sm:$0xff]   ;;  %v1021_v16 = vld [vmem:[#allocation2 + $0x60] sm:$0xff]  }
  0x18   :  { %869 = vmatprep.subr.bf16.mxu1 %v1011_v6  ;;  %v1018_v13 = vld [vmem:[#allocation2 + $0x18] sm:$0xff]   ;;  %v1022_v17 = vld [vmem:[#allocation2 + $0x20] sm:$0xff]   ;;  %v1025_v20 = vld [vmem:[#allocation2 + $0x68] sm:$0xff]   ;;  %v158_v36 = vsub.s32 %v155_v30, %v157_v31 }
  0x19   :  { %848 = vmatpush3.bf16.msra.mxu0 %v1010_v5  ;;  %v1019_v14 = vld [vmem:[#allocation2 + $0xd8] sm:$0xff]   ;;  %v1023_v18 = vld [vmem:[#allocation2 + $0xe0] sm:$0xff]   ;;  %v1026_v21 = vld [vmem:[#allocation2 + $0x28] sm:$0xff]  }
  0x1a   :  { %849 = vmatprep.subr.bf16.mxu0 %v1013_v8  ;;  %v1020_v15 = vld [vmem:[#allocation2 + $0x98] sm:$0xff]   ;;  %v1024_v19 = vld [vmem:[#allocation2 + $0xa0] sm:$0xff]   ;;  %v1027_v22 = vld [vmem:[#allocation2 + $0xe8] sm:$0xff]  }
  0x1b   :  { %870 = vmatpush3.bf16.msra.mxu1 %v1012_v7  ;;  %v1028_v26 = vld [vmem:[#allocation2 + $0xa8] sm:$0xff]   ;;  %v1029_v27 = vld [vmem:[#allocation2 + $0x70] sm:$0xff]   ;;  %v1033_v33 = vld [vmem:[#allocation2 + $0x78] sm:$0xff]  }
  0x1c   :  { %871 = vmatprep.subr.bf16.mxu1 %v1015_v10  ;;  %v1030_v28 = vld [vmem:[#allocation2 + $0x30] sm:$0xff]   ;;  %v1034_v34 = vld [vmem:[#allocation2 + $0x38] sm:$0xff]   ;;  %v1036_v37 = vld [vmem:[%s1240_s0] ss:$7 sps:$4 sm:$0xff]  }
  0x1d   :  { %850 = vmatpush3.bf16.msra.mxu0 %v1014_v9  ;;  %v1031_v29 = vld [vmem:[#allocation2 + $0xf0] sm:$0xff]   ;;  %v1035_v35 = vld [vmem:[#allocation2 + $0xf8] sm:$0xff]   ;;  %v1038_v39 = vld [vmem:[%s1240_s0 + $0x4] ss:$7 sps:$4 sm:$0x77]   ;;  %v159_v41 = vrot.slane %v1036_v37, %v158_v36 }
  0x1e   :  { %851 = vmatprep.subr.bf16.mxu0 %v1017_v12  ;;  %v1032_v32 = vld [vmem:[#allocation2 + $0xb0] sm:$0xff]   ;;  %v1042_v43 = vld [vmem:[#allocation2 + $0xb8] sm:$0xff]   ;;  %v1043_v44 = vld [vmem:[#allocation2 + $0x140] sm:$0xff]   ;;  %v166_v45 = vrot.slane %v1038_v39, %v158_v36 }
  0x1f   :  { %872 = vmatpush3.bf16.msra.mxu1 %v1016_v11  ;;  %v1039_v38 = vld [vmem:[%s1240_s0 + $0xe] ss:$7 sps:$4 sm:$0xff]   ;;  %v1041_v40 = vld [vmem:[%s1240_s0 + $0x12] ss:$7 sps:$4 sm:$0x77]   ;;  %v1044_v53 = vld [vmem:[#allocation2 + $0x100] sm:$0xff]  }
  0x20   :  { %873 = vmatprep.subr.bf16.mxu1 %v1019_v14  ;;  %v173_v42 = vrot.slane %v1039_v38, %v158_v36  ;;  %v180_v46 = vrot.slane %v1041_v40, %v158_v36  ;;  %v1045_v54 = vld [vmem:[#allocation2 + $0x148] sm:$0xff]   ;;  %v1047_v59 = vld [vmem:[#allocation2 + $0x150] sm:$0xff]   ;;  %v1049_v62 = vld [vmem:[#allocation2 + $0x158] sm:$0xff]   ;;  %v1114_v14 = vmov 0.0|0.0  }
  0x21   :  { %852 = vmatpush3.bf16.msra.mxu0 %v1018_v13  ;;  %v1046_v58 = vld [vmem:[#allocation2 + $0x108] sm:$0xff]   ;;  %v1048_v61 = vld [vmem:[#allocation2 + $0x110] sm:$0xff]   ;;  %v1050_v0 = vld [vmem:[#allocation2 + $0x118] sm:$0xff]  }
  0x22   :  { %853 = vmatprep.subr.bf16.mxu0 %v1021_v16  ;;  %v182_v47 = vcombine.high %v159_v41, %v173_v42  ;;  %v181_v48 = vcombine.low %v159_v41, %v173_v42  ;;  %v184_v50 = vcombine.high %v166_v45, %v180_v46  ;;  %v183_v60 = vcombine.low %v166_v45, %v180_v46  ;;  %v1051_v1 = vld [vmem:[#allocation2 + $0x160] sm:$0xff]   ;;  %v1053_v5 = vld [vmem:[#allocation2 + $0x168] sm:$0xff]   ;;  %v1055_v7 = vld [vmem:[#allocation2 + $0x170] sm:$0xff]  }
  0x23   :  { %874 = vmatpush3.bf16.msra.mxu1 %v1020_v15  ;;  %v1059_v2 = vld [vmem:[#allocation2 + $0x180] sm:$0xff]   ;;  %v1054_v6 = vld [vmem:[#allocation2 + $0x128] sm:$0xff]   ;;  %v1056_v8 = vld [vmem:[#allocation2 + $0x130] sm:$0xff]  }
  0x24   :  { %875 = vmatprep.subr.bf16.mxu1 %v1023_v18  ;;  %v205_v51 = vrot.slane %v182_v47, %v158_v36  ;;  %v191_v52 = vrot.slane %v181_v48, %v158_v36  ;;  %v212_v57 = vrot.slane %v184_v50, %v158_v36  ;;  %v198_v63 = vrot.slane %v183_v60, %v158_v36  ;;  %v1052_v4 = vld [vmem:[#allocation2 + $0x120] sm:$0xff]   ;;  %v1057_v9 = vld [vmem:[#allocation2 + $0x178] sm:$0xff]   ;;  %v682_v12 = vld [vmem:[%s1243_s3 + $0x8] sm:$0xff] }
  0x25   :  { %854 = vmatpush3.bf16.msra.mxu0 %v1022_v17  ;;  %v1058_v10 = vld [vmem:[#allocation2 + $0x138] sm:$0xff]   ;;  %v681_v11 = vld [vmem:[%s1243_s3] sm:$0xff]  ;;  %v683_v13 = vld [vmem:[%s1243_s3 + $0x10] sm:$0xff] }
  0x26   :  { %855 = vmatprep.subr.bf16.mxu0 %v1025_v20  ;;  %552 = vmatprep.mubr.bf16.mxu0 %v205_v51  ;;  %v215_v55 = vcombine.high %v205_v51, %v205_v51  ;;  %v213_v56 = vcombine.high %v191_v52, %v191_v52  ;;  %v214_v3 = vcombine.high %v198_v63, %v198_v63  ;;  %v684_v16 = vld [vmem:[%s1243_s3 + $0x18] sm:$0xff]  ;;  %v685_v18 = vld [vmem:[%s1243_s3 + $0x20] sm:$0xff]  ;;  %v690_v25 = vld [vmem:[%s1243_s3 + $0x48] sm:$0xff] }
  0x27   :  { %876 = vmatpush3.bf16.msra.mxu1 %v1024_v19  ;;  %v972_v15 = vpack.c.bf16 %v682_v12, %v681_v11  ;;  %v975_v17 = vpack.c.bf16 %v684_v16, %v683_v13  ;;  %v686_v19 = vld [vmem:[%s1243_s3 + $0x28] sm:$0xff]  ;;  %v689_v24 = vld [vmem:[%s1243_s3 + $0x40] sm:$0xff] }
  0x28   :  { %877 = vmatprep.subr.bf16.mxu1 %v1027_v22  ;;  %592 = vmatprep.mubr.bf16.mxu1 %v215_v55  ;;  %v978_v20 = vpack.c.bf16 %v686_v19, %v685_v18  ;;  %v688_v22 = vld [vmem:[%s1243_s3 + $0x38] sm:$0xff]  ;;  %v693_v30 = vld [vmem:[%s1243_s3 + $0x60] sm:$0xff]  ;;  %v694_v31 = vld [vmem:[%s1243_s3 + $0x68] sm:$0xff] }
  0x29   :  { %856 = vmatpush3.bf16.msra.mxu0 %v1026_v21  ;;  %v687_v21 = vld [vmem:[%s1243_s3 + $0x30] sm:$0xff]  ;;  %v793_v37 = vld [vmem:[%s1242_s2] ss:$0 sm:$0xff] }
  0x2a   :  { %857 = vmatprep.subr.bf16.mxu0 %v1029_v27  ;;  %v981_v23 = vpack.c.bf16 %v688_v22, %v687_v21  ;;  %v691_v27 = vld [vmem:[%s1243_s3 + $0x50] sm:$0xff] }
  0x2b   :  { %878 = vmatpush3.bf16.msra.mxu1 %v1028_v26  ;;  %v984_v26 = vpack.c.bf16 %v690_v25, %v689_v24 }
  0x2c   :  { %879 = vmatprep.subr.bf16.mxu1 %v1031_v29 }
  0x2d   :  { %858 = vmatpush3.bf16.msra.mxu0 %v1030_v28  ;;  %v692_v28 = vld [vmem:[%s1243_s3 + $0x58] sm:$0xff] }
  0x2e   :  { %859 = vmatprep.subr.bf16.mxu0 %v1033_v33  ;;  %v987_v29 = vpack.c.bf16 %v692_v28, %v691_v27  ;;  %v695_v33 = vld [vmem:[%s1243_s3 + $0x70] sm:$0xff] }
  0x2f   :  { %880 = vmatpush3.bf16.msra.mxu1 %v1032_v32  ;;  %v990_v32 = vpack.c.bf16 %v694_v31, %v693_v30 }
  0x30   :  { %881 = vmatprep.subr.bf16.mxu1 %v1035_v35 }
  0x31   :  { %860 = vmatpush3.bf16.msra.mxu0 %v1034_v34  ;;  %v696_v34 = vld [vmem:[%s1243_s3 + $0x78] sm:$0xff] }
  0x32   :  { %889 = vmatprep.subr.bf16.mxu0 %v1043_v44  ;;  %v993_v35 = vpack.c.bf16 %v696_v34, %v695_v33 }
  0x33   :  { %882 = vmatpush3.bf16.msra.mxu1 %v1042_v43 }
  0x34   :  { %930 = vmatprep.subr.bf16.mxu1 %v1112_v49  ;;  %553 = vmatmul.mubr.bf16.vlgmr.msra.gmra.mrb[0].mxu0 %v191_v52 }
  0x35   :  { %890 = vmatpush3.bf16.msra.mxu0 %v1044_v53  ;;  %632 = vmatprep.mubr.bf16.mxu0 %v212_v57 }
  0x36   :  { %593 = vmatmul.mubr.bf16.vlgmr.msra.gmra.mrb[0].mxu1 %v213_v56  ;;  %891 = vmatprep.subr.bf16.mxu0 %v1045_v54 }
  0x37   :  { %932 = vmatprep.mubr.msk.bf16.mxu1 %vm1113_vm0, %v1112_v49  ;;  %931 = vmatpush3.bf16.msra.mxu1 %v1059_v2 }
  0x38   :  { %971 = vmatprep.subr.bf16.mxu1 %v1114_v14 }
  0x39   :  { %892 = vmatpush3.bf16.msra.mxu0 %v1046_v58 }
  0x3a   :  { %893 = vmatprep.subr.bf16.mxu0 %v1047_v59 }
  0x3d   :  { %894 = vmatpush3.bf16.msra.mxu0 %v1048_v61  ;;  %v844_v61 = vld [vmem:[%s1244_s4] ss:$0 sm:$0xff] }
  0x3e   :  { %895 = vmatprep.subr.bf16.mxu0 %v1049_v62  ;;  %933 = vmatmul.mubr.msk.bf16.vlgmr.msra.gmra.mrb[4].mxu1 %vm516_vm1, %v214_v3 }
  0x3f   :  { %968 = vmatprep.mubr.msk.f32.mxu1 %vm1113_vm0, %v1112_v49  ;;  %973 = vmatpush3.bf16.msra.mxu1 %v972_v15 }
  0x40   :  { %974 = vmatprep.subr.bf16.mxu1 %v1114_v14 }
  0x41   :  { %896 = vmatpush3.bf16.msra.mxu0 %v1050_v0 }
  0x42   :  { %897 = vmatprep.subr.bf16.mxu0 %v1051_v1 }
  0x43   :  { %976 = vmatpush3.bf16.msra.mxu1 %v975_v17 }
  0x44   :  { %977 = vmatprep.subr.bf16.mxu1 %v1114_v14 }
  0x45   :  { %898 = vmatpush3.bf16.msra.mxu0 %v1052_v4 }
  0x46   :  { %899 = vmatprep.subr.bf16.mxu0 %v1053_v5 }
  0x47   :  { %979 = vmatpush3.bf16.msra.mxu1 %v978_v20 }
  0x48   :  { %980 = vmatprep.subr.bf16.mxu1 %v1114_v14 }
  0x49   :  { %900 = vmatpush3.bf16.msra.mxu0 %v1054_v6 }
  0x4a   :  { %901 = vmatprep.subr.bf16.mxu0 %v1055_v7 }
  0x4b   :  { %982 = vmatpush3.bf16.msra.mxu1 %v981_v23 }
  0x4c   :  { %983 = vmatprep.subr.bf16.mxu1 %v1114_v14 }
  0x4d   :  { %902 = vmatpush3.bf16.msra.mxu0 %v1056_v8 }
  0x4e   :  { %903 = vmatprep.subr.bf16.mxu0 %v1057_v9 }
  0x4f   :  { %985 = vmatpush3.bf16.msra.mxu1 %v984_v26 }
  0x50   :  { %986 = vmatprep.subr.bf16.mxu1 %v1114_v14 }
  0x51   :  { %904 = vmatpush3.bf16.msra.mxu0 %v1058_v10 }
  0x53   :  { %988 = vmatpush3.bf16.msra.mxu1 %v987_v29 }
  0x54   :  { %633 = vmatmul.mubr.bf16.vlgmr.msra.gmra.mrb[4].mxu0 %v198_v63  ;;  %989 = vmatprep.subr.bf16.mxu1 %v1114_v14 }
  0x57   :  { %991 = vmatpush3.bf16.msra.mxu1 %v990_v32 }
  0x58   :  { %992 = vmatprep.subr.bf16.mxu1 %v1114_v14 }
  0x5b   :  { %994 = vmatpush3.bf16.msra.mxu1 %v993_v35 }
 0x107   :  { %v861_v36 = vpop.f32.mrb[0].mxu0 }
 0x108   :  { %v862_v38 = vpop.f32.mrb[1].mxu0 }
 0x109   :  { %v863_v39 = vadd.f32 %v862_v38, %v861_v36  ;;  %v864_v40 = vpop.f32.mrb[2].mxu0  ;;  %v883_v41 = vpop.f32.mrb[0].mxu1 }
 0x10a   :  { %v865_v42 = vpop.f32.mrb[3].mxu0  ;;  %v884_v43 = vpop.f32.mrb[1].mxu1 }
 0x10b   :  { %v555_v44 = vadd.f32 %v863_v39, %v793_v37  ;;  %v885_v45 = vadd.f32 %v884_v43, %v883_v41  ;;  %v886_v46 = vpop.f32.mrb[2].mxu1 }
 0x10c   :  { %v887_v47 = vpop.f32.mrb[3].mxu1 }
 0x10d   :  { %v595_v48 = vadd.f32 %v885_v45, %v555_v44 }
 0x111   :  { %v674_v49 = vpop.f32.mrb[4].mxu1 }
 0x112   :  { %v934_v50 = vpop.f32.mrb[5].mxu1 }
 0x113   :  { %v677_v51 = vpop.f32.mrb[6].mxu1 }
 0x114   :  { %v935_v52 = vpop.f32.mrb[7].mxu1 }
 0x127   :  { %v905_v53 = vpop.f32.mrb[4].mxu0 }
 0x128   :  { %v906_v54 = vpop.f32.mrb[5].mxu0 }
 0x129   :  { %v907_v55 = vadd.f32 %v906_v54, %v905_v53  ;;  %v908_v56 = vpop.f32.mrb[6].mxu0 }
 0x12a   :  { %v909_v57 = vpop.f32.mrb[7].mxu0 }
 0x12b   :  { %v635_v58 = vadd.f32 %v907_v55, %v595_v48 }
 0x12d   :  { %v675_v59 = vadd.f32 %v674_v49, %v635_v58 }
 0x12f   :  { %v680_v60 = vmax.f32 %v675_v59, 0.0 }
 0x131   :  { %969 = vmatmul.mubr.f32.vlgmr.msra.gmra.mrb[8].mxu1 %v680_v60 }
 0x204   :  { %v770_v62 = vpop.f32.mrb[8].mxu1 }
 0x205   :  { %v771_v63 = vadd.f32 %v844_v61, %v770_v62  ;;  %v970_v0 = vpop.f32.mrb[9].mxu1 }
 0x207   :  { %775 = vst.msk [vmem:[#allocation5] sm:$0xff] %vm774_vm2, %v771_v63 }
 0x208   :  { %780 = vsyncadd [#allocation4], 96  ;;  %s1115_s20 = smov [#allocation5]  }
 0x209   :  { %s781_s21 = sshll.u32 %s1115_s20, 4  ;;  %s782_s21 = int_to_ptr.vmem [resolvable:$true] %s781_s21 }
 0x20a   :  { %s1082_s22 = scalar_lea.vmem %s782_s21, 32  ;;  %s1086_s23 = scalar_lea.vmem %s782_s21, 128 }
 0x20b   :  { %p1083_p8 = scmp.ne.s32.totalorder %s782_s21, %s1082_s22  ;;  %p1087_p9 = scmp.lt.s32.totalorder %s782_s21, %s782_s21 }
 0x20c   :  { %p1088_p10 = scmp.lt.s32.totalorder %s1086_s23, %s1082_s22 }
 0x20e   :  { %p1089_p11 = por %p1088_p10, %p1087_p9 }
 0x210   :  { %p1090_p12 = pnand %p1089_p11, %p1083_p8 }
 0x212   :  { %1093 = shalt.err (!%p1090_p12)
}
 0x213   :  { %s1094_s4 = scalar_lea.hbm %s1245_s5, 32 }
 0x214   :  { %p1095_p13 = scmp.ne.s32.totalorder %s1245_s5, %s1094_s4  ;;  %p1098_p0 = scmp.lt.u32.totalorder %s1094_s4, %s1245_s5 }
 0x216   :  { %p1100_p1 = pnand %p1098_p0, %p1095_p13 }
 0x218   :  { %1103 = shalt.err (!%p1100_p1)
}
 0x219   :  { %s1116_s30 = smov 32   ;;  %s1117_s6 = smov 2  }
 0x21a   :  { %787 = dma.vmem_to_hbm [thread:$0]  %s782_s21, 32, %s1245_s5, [#allocation4], %s1116_s30, %s1116_s30, %s1117_s6  }
 0x21b   :  { %1106 = dma.done.wait [#allocation4], 128  }
 0x21c   :  { %1107 = vsyncadd [#allocation4], 4294967168 }
 0x21d   :  { %791 = vsyncpa [#allocation3], 1 }
 0x21e   :  { %792 = vsyncpa [#allocation4], 1 }

</bundles_post_ra>
